<compile_context>
chip_gen: v6e
topology: v6e:2x2x1
jax: 0.10.0
libtpu: 0.0.40
codegen_flags: <defaults>
</compile_context>

<pallas_src>
import functools

import jax
import jax.numpy as jnp
from jax.experimental import pallas as pl
from jax.experimental.pallas import tpu as pltpu


# --------------------------------------------------------------------------- #
# helpers
# --------------------------------------------------------------------------- #
def _round_up(x, m):
    return (x + m - 1) // m * m


def _cdiv(a, b):
    return (a + b - 1) // b


def _choose_tile(dim, target, align):
    """Balanced tile for `dim`: a multiple of `align`, <= ~round_up(target, align),
    chosen so the padded extent (tile * n_tiles) wastes as little as possible."""
    dim_al = _round_up(max(dim, 1), align)
    target = max(align, target)
    n = max(1, _cdiv(dim_al, target))
    t = _round_up(_cdiv(dim_al, n), align)
    return t, t * n


def _device_params():
    """Returns (vmem_budget_bytes, tm_target, tk_target, tn_target) per TPU gen."""
    kind = ""
    try:
        kind = jax.devices()[0].device_kind.lower()
    except Exception:
        pass
    vmem_cap = None
    try:
        vmem_cap = int(getattr(pltpu.get_tpu_info(), "vmem_capacity_bytes", 0)) or None
    except Exception:
        vmem_cap = None

    is_v7 = ("v7" in kind) or ("tpu7" in kind) or (
        vmem_cap is not None and vmem_cap <= 64 * 2**20)
    if vmem_cap is None:
        # Conservative default if we cannot query: assume the smaller (v7x) VMEM.
        vmem_cap = 64 * 2**20 if (is_v7 or not kind) else 128 * 2**20
    vmem_budget = int(0.78 * vmem_cap)   # headroom for compiler scratch/semaphores

    if is_v7:
        tm_t, tk_t, tn_t = 512, 256, 512      # ~3.2 TB/s HBM: modest tm suffices
    elif "v6" in kind:
        tm_t, tk_t, tn_t = 768, 512, 1024     # weight re-streaming roofline ~700 f/B
    elif "v5" in kind:
        tm_t, tk_t, tn_t = 256, 512, 1024
    else:
        tm_t, tk_t, tn_t = 512, 512, 512
    return vmem_budget, tm_t, tk_t, tn_t


# --------------------------------------------------------------------------- #
# kernel
# --------------------------------------------------------------------------- #
_INV_SQRT2 = 0.7071067811865476


def _mlp_kernel(x_ref, w1_ref, b1_ref, w2_ref, b2_ref, o_ref, acc_ref):
    """One (row tile i, Cout tile j, hidden chunk k) step of
       out = GELU(x @ w1 + b1) @ w2 + b2   (dropout p=0.0 == identity)."""
    k = pl.program_id(2)

    @pl.when(k == 0)
    def _():
        acc_ref[...] = jnp.zeros_like(acc_ref)

    # fc1 chunk on the MXU (f32 accumulation); bias + exact (erf) GELU in f32.
    h = jnp.dot(x_ref[...], w1_ref[...], preferred_element_type=jnp.float32)
    h = h + b1_ref[...].astype(jnp.float32)
    h = 0.5 * h * (1.0 + jax.lax.erf(h * jnp.float32(_INV_SQRT2)))

    # Partial fc2 product for this hidden chunk, accumulated in f32 VMEM scratch.
    acc_ref[...] += jnp.dot(h.astype(w2_ref.dtype), w2_ref[...],
                            preferred_element_type=jnp.float32)

    @pl.when(k == pl.num_programs(2) - 1)
    def _():
        o_ref[...] = (acc_ref[...] + b2_ref[...].astype(jnp.float32)).astype(o_ref.dtype)


# --------------------------------------------------------------------------- #
# wrapper
# --------------------------------------------------------------------------- #
@functools.partial(jax.jit, static_argnames=("cast_to_bf16",))
def mlp_pallas(x, w1, b1, w2, b2, cast_to_bf16=False):
    """x: (B, N, Cin) -> (B, N, Cout)."""
    out_dtype = x.dtype
    if cast_to_bf16:
        # Optional fast path (small numerics change vs. pure-f32 reference).
        x = x.astype(jnp.bfloat16)
        w1 = w1.astype(jnp.bfloat16)
        w2 = w2.astype(jnp.bfloat16)

    B, N, Cin = x.shape
    Chid = w1.shape[1]
    Cout = w2.shape[1]
    M = B * N

    isx = jnp.dtype(x.dtype).itemsize
    isw1 = jnp.dtype(w1.dtype).itemsize
    isb1 = jnp.dtype(b1.dtype).itemsize
    isw2 = jnp.dtype(w2.dtype).itemsize
    isb2 = jnp.dtype(b2.dtype).itemsize
    iso = jnp.dtype(out_dtype).itemsize

    # ---- generation-aware tiling -------------------------------------------
    vmem_budget, tm_t, tk_t, tn_t = _device_params()
    pack = {4: 8, 2: 16, 1: 32}.get(isx, 8)            # sublane pack per dtype

    tm, M_pad = _choose_tile(M, tm_t, pack)
    tk, Chid_pad = _choose_tile(Chid, tk_t, 128)        # hidden padded to >=128
    tn, Cout_pad = _choose_tile(Cout, tn_t, 128)        # lane-dense output tile

    def vmem_est(tm_, tk_, tn_):
        return (2 * (tm_ * Cin * isx                     # x block (double-buffered)
                     + Cin * tk_ * isw1 + tk_ * isb1     # w1 / b1 chunks
                     + tk_ * tn_ * isw2 + tn_ * isb2     # w2 / b2 chunks
                     + tm_ * tn_ * iso)                  # output tile
                + tm_ * tn_ * 4                          # f32 accumulator scratch
                + 2 * tm_ * tk_ * 4)                     # f32 GELU intermediate headroom

    # Shrink (tk -> tn -> tm) until the tile set fits the per-generation budget.
    while vmem_est(tm, tk, tn) > vmem_budget:
        if tk > 256:
            tk, Chid_pad = _choose_tile(Chid, tk // 2, 128)
        elif tn > 256:
            tn, Cout_pad = _choose_tile(Cout, tn // 2, 128)
        elif tm > 2 * pack:
            tm, M_pad = _choose_tile(M, max(pack, tm // 2), pack)
        else:
            break

    # ---- zero padding (exact math; padded rows/cols sliced off afterwards) --
    x2d = x.reshape(M, Cin)
    if M_pad != M:
        x2d = jnp.pad(x2d, ((0, M_pad - M), (0, 0)))
    w1_p = jnp.pad(w1, ((0, 0), (0, Chid_pad - Chid)))
    b1_p = jnp.pad(b1, (0, Chid_pad - Chid)).reshape(1, Chid_pad)
    w2_p = jnp.pad(w2, ((0, Chid_pad - Chid), (0, Cout_pad - Cout)))
    b2_p = jnp.pad(b2, (0, Cout_pad - Cout)).reshape(1, Cout_pad)

    n_i, n_j, n_k = M_pad // tm, Cout_pad // tn, Chid_pad // tk
    grid = (n_i, n_j, n_k)

    # ---- cost hint (accounts for w1/w2 re-streaming across i/j tiles) -------
    cost = pl.CostEstimate(
        flops=int(2 * M_pad * Chid_pad * (Cin * n_j + Cout_pad)),
        transcendentals=int(M_pad * Chid_pad * n_j),
        bytes_accessed=int(
            M_pad * Cin * isx
            + n_i * n_j * (Cin * Chid_pad * isw1 + Chid_pad * isb1)
            + n_i * (Chid_pad * Cout_pad * isw2 + Cout_pad * isb2)
            + M_pad * Cout_pad * iso),
    )

    out2d = pl.pallas_call(
        _mlp_kernel,
        out_shape=jax.ShapeDtypeStruct((M_pad, Cout_pad), out_dtype),
        grid_spec=pltpu.PrefetchScalarGridSpec(
            num_scalar_prefetch=0,
            grid=grid,
            in_specs=[
                pl.BlockSpec((tm, Cin), lambda i, j, k: (i, 0)),    # x row tile
                pl.BlockSpec((Cin, tk), lambda i, j, k: (0, k)),    # w1 hidden chunk
                pl.BlockSpec((1, tk), lambda i, j, k: (0, k)),      # b1 hidden chunk
                pl.BlockSpec((tk, tn), lambda i, j, k: (k, j)),     # w2 (hidden, cout) tile
                pl.BlockSpec((1, tn), lambda i, j, k: (0, j)),      # b2 cout tile
            ],
            out_specs=pl.BlockSpec((tm, tn), lambda i, j, k: (i, j)),
            scratch_shapes=[pltpu.VMEM((tm, tn), jnp.float32)],
        ),
        compiler_params=pltpu.CompilerParams(
            dimension_semantics=("parallel", "parallel", "arbitrary"),
            vmem_limit_bytes=int(vmem_budget),
        ),
        cost_estimate=cost,
    )(x2d, w1_p, b1_p, w2_p, b2_p)

    return out2d[:M, :Cout].reshape(B, N, Cout)


# --------------------------------------------------------------------------- #
# reference + test
# --------------------------------------------------------------------------- #
def _reference_mlp(x, w1, b1, w2, b2):
    h = jnp.einsum("bnc,ch->bnh", x, w1) + b1
    h = jax.nn.gelu(h, approximate=False)
    return jnp.einsum("bnh,ho->bno", h, w2) + b2


if __name__ == "__main__":
    in_features, hidden_features, out_features = 32, 64, 32

    key = jax.random.PRNGKey(0)
    kx, kw1, kb1, kw2, kb2 = jax.random.split(key, 5)

    w1 = jax.random.normal(kw1, (in_features, hidden_features), jnp.float32) * 0.05
    b1 = jax.random.normal(kb1, (hidden_features,), jnp.float32) * 0.05
    w2 = jax.random.normal(kw2, (hidden_features, out_features), jnp.float32) * 0.05
    b2 = jax.random.normal(kb2, (out_features,), jnp.float32) * 0.05

    # Case 1: tokens (B, N, C) = (2, 8, 32)
    x = jax.random.normal(kx, (2, 8, in_features), dtype=jnp.float32)
    out = jax.block_until_ready(mlp_pallas(x, w1, b1, w2, b2))
    ref = _reference_mlp(x, w1, b1, w2, b2)
    assert out.shape == (2, 8, out_features)
    assert jnp.allclose(out, ref, atol=1e-5, rtol=1e-5)

    # Case 2: row count not divisible by the sublane pack -> exercises padding.
    x2 = jax.random.normal(kx, (2, 5, in_features), dtype=jnp.float32)
    out2 = jax.block_until_ready(mlp_pallas(x2, w1, b1, w2, b2))
    ref2 = _reference_mlp(x2, w1, b1, w2, b2)
    assert out2.shape == (2, 5, out_features)
    assert jnp.allclose(out2, ref2, atol=1e-5, rtol=1e-5)

    print("KERNEL_OK")
</pallas_src>

<mosaic_0001>
module attributes {stable_mosaic.version = 11 : i64} {
  func.func @_mlp_kernel(%arg0: i32, %arg1: i32, %arg2: i32, %arg3: memref<16x32xf32, #tpu.memory_space<vmem>>, %arg4: memref<32x128xf32, #tpu.memory_space<vmem>>, %arg5: memref<1x128xf32, #tpu.memory_space<vmem>>, %arg6: memref<128x128xf32, #tpu.memory_space<vmem>>, %arg7: memref<1x128xf32, #tpu.memory_space<vmem>>, %arg8: memref<16x128xf32, #tpu.memory_space<vmem>>, %arg9: memref<16x128xf32, #tpu.memory_space<vmem>>) attributes {dimension_semantics = [#tpu.dimension_semantics<parallel>, #tpu.dimension_semantics<parallel>, #tpu.dimension_semantics<arbitrary>], iteration_bounds = array<i64: 1, 1, 1>, scalar_prefetch = 0 : i64, scratch_operands = 1 : i64, tpu.core_type = #tpu.core_type<tc>, window_params = [{transform_indices = @transform_0, window_bounds = array<i64: 16, 32>}, {transform_indices = @transform_1, window_bounds = array<i64: 32, 128>}, {transform_indices = @transform_2, window_bounds = array<i64: 1, 128>}, {transform_indices = @transform_3, window_bounds = array<i64: 128, 128>}, {transform_indices = @transform_4, window_bounds = array<i64: 1, 128>}, {transform_indices = @transform_5, window_bounds = array<i64: 16, 128>}]} {
    %c0_i32 = arith.constant 0 : i32
    %0 = arith.cmpi eq, %arg2, %c0_i32 : i32
    %1 = arith.extui %0 : i1 to i32
    %c0_i32_0 = arith.constant 0 : i32
    %2 = arith.cmpi ne, %1, %c0_i32_0 : i32
    scf.if %2 {
      %cst_18 = arith.constant 0.000000e+00 : f32
      %25 = vector.broadcast %cst_18 : f32 to vector<16x128xf32>
      %c0_19 = arith.constant 0 : index
      %c0_20 = arith.constant 0 : index
      %26 = vector.load %arg9[%c0_19, %c0_20] : memref<16x128xf32, #tpu.memory_space<vmem>>, vector<16x128xf32>
      tpu.vector_store %arg9[%c0_19, %c0_20], %25 {strides = array<i32>} : memref<16x128xf32, #tpu.memory_space<vmem>>, vector<16x128xf32>,
    } else {
    }
    %c0 = arith.constant 0 : index
    %c0_1 = arith.constant 0 : index
    %3 = vector.load %arg3[%c0, %c0_1] : memref<16x32xf32, #tpu.memory_space<vmem>>, vector<16x32xf32>
    %c0_2 = arith.constant 0 : index
    %c0_3 = arith.constant 0 : index
    %4 = vector.load %arg4[%c0_2, %c0_3] : memref<32x128xf32, #tpu.memory_space<vmem>>, vector<32x128xf32>
    %cst = arith.constant dense<0.000000e+00> : vector<16x128xf32>
    %5 = tpu.matmul %3, %4, %cst {dimension_numbers = #tpu.dot_dimension_numbers<[1], [0], [0], [1], [0, 0, 1, 1], [], []>} : vector<16x32xf32>, vector<32x128xf32>, vector<16x128xf32> -> vector<16x128xf32>
    %c0_4 = arith.constant 0 : index
    %c0_5 = arith.constant 0 : index
    %6 = vector.load %arg5[%c0_4, %c0_5] : memref<1x128xf32, #tpu.memory_space<vmem>>, vector<1x128xf32>
    %7 = vector.broadcast %6 : vector<1x128xf32> to vector<16x128xf32>
    %8 = arith.addf %5, %7 : vector<16x128xf32>
    %cst_6 = arith.constant 5.000000e-01 : f32
    %9 = vector.broadcast %cst_6 : f32 to vector<16x128xf32>
    %10 = arith.mulf %9, %8 : vector<16x128xf32>
    %cst_7 = arith.constant 0.707106769 : f32
    %11 = vector.broadcast %cst_7 : f32 to vector<16x128xf32>
    %12 = arith.mulf %8, %11 : vector<16x128xf32>
    %13 = math.erf %12 : vector<16x128xf32>
    %cst_8 = arith.constant 1.000000e+00 : f32
    %14 = vector.broadcast %cst_8 : f32 to vector<16x128xf32>
    %15 = arith.addf %14, %13 : vector<16x128xf32>
    %16 = arith.mulf %10, %15 : vector<16x128xf32>
    %c0_9 = arith.constant 0 : index
    %c0_10 = arith.constant 0 : index
    %17 = vector.load %arg9[%c0_9, %c0_10] : memref<16x128xf32, #tpu.memory_space<vmem>>, vector<16x128xf32>
    %c0_11 = arith.constant 0 : index
    %c0_12 = arith.constant 0 : index
    %18 = vector.load %arg6[%c0_11, %c0_12] : memref<128x128xf32, #tpu.memory_space<vmem>>, vector<128x128xf32>
    %cst_13 = arith.constant dense<0.000000e+00> : vector<16x128xf32>
    %19 = tpu.matmul %16, %18, %cst_13 {dimension_numbers = #tpu.dot_dimension_numbers<[1], [0], [0], [1], [0, 0, 1, 1], [], []>} : vector<16x128xf32>, vector<128x128xf32>, vector<16x128xf32> -> vector<16x128xf32>
    %20 = arith.addf %17, %19 : vector<16x128xf32>
    %c0_14 = arith.constant 0 : index
    %c0_15 = arith.constant 0 : index
    %21 = vector.load %arg9[%c0_14, %c0_15] : memref<16x128xf32, #tpu.memory_space<vmem>>, vector<16x128xf32>
    tpu.vector_store %arg9[%c0_14, %c0_15], %20 {strides = array<i32>} : memref<16x128xf32, #tpu.memory_space<vmem>>, vector<16x128xf32>,
    %c0_i32_16 = arith.constant 0 : i32
    %22 = arith.cmpi eq, %arg2, %c0_i32_16 : i32
    %23 = arith.extui %22 : i1 to i32
    %c0_i32_17 = arith.constant 0 : i32
    %24 = arith.cmpi ne, %23, %c0_i32_17 : i32
    scf.if %24 {
      %c0_18 = arith.constant 0 : index
      %c0_19 = arith.constant 0 : index
      %25 = vector.load %arg9[%c0_18, %c0_19] : memref<16x128xf32, #tpu.memory_space<vmem>>, vector<16x128xf32>
      %c0_20 = arith.constant 0 : index
      %c0_21 = arith.constant 0 : index
      %26 = vector.load %arg7[%c0_20, %c0_21] : memref<1x128xf32, #tpu.memory_space<vmem>>, vector<1x128xf32>
      %27 = vector.broadcast %26 : vector<1x128xf32> to vector<16x128xf32>
      %28 = arith.addf %25, %27 : vector<16x128xf32>
      %c0_22 = arith.constant 0 : index
      %c0_23 = arith.constant 0 : index
      %29 = vector.load %arg8[%c0_22, %c0_23] : memref<16x128xf32, #tpu.memory_space<vmem>>, vector<16x128xf32>
      tpu.vector_store %arg8[%c0_22, %c0_23], %28 {strides = array<i32>} : memref<16x128xf32, #tpu.memory_space<vmem>>, vector<16x128xf32>,
    } else {
    }
    return
  }
  func.func @transform_0(%arg0: i32, %arg1: i32, %arg2: i32) -> (i32, i32) {
    %c0_i32 = arith.constant 0 : i32
    %c0_i32_0 = arith.constant 0 : i32
    return %arg0, %c0_i32 : i32, i32
  }
  func.func @transform_1(%arg0: i32, %arg1: i32, %arg2: i32) -> (i32, i32) {
    %c0_i32 = arith.constant 0 : i32
    %c0_i32_0 = arith.constant 0 : i32
    return %c0_i32, %arg2 : i32, i32
  }
  func.func @transform_2(%arg0: i32, %arg1: i32, %arg2: i32) -> (i32, i32) {
    %c0_i32 = arith.constant 0 : i32
    %c0_i32_0 = arith.constant 0 : i32
    return %c0_i32, %arg2 : i32, i32
  }
  func.func @transform_3(%arg0: i32, %arg1: i32, %arg2: i32) -> (i32, i32) {
    %c0_i32 = arith.constant 0 : i32
    return %arg2, %arg1 : i32, i32
  }
  func.func @transform_4(%arg0: i32, %arg1: i32, %arg2: i32) -> (i32, i32) {
    %c0_i32 = arith.constant 0 : i32
    %c0_i32_0 = arith.constant 0 : i32
    return %c0_i32, %arg1 : i32, i32
  }
  func.func @transform_5(%arg0: i32, %arg1: i32, %arg2: i32) -> (i32, i32) {
    %c0_i32 = arith.constant 0 : i32
    return %arg0, %arg1 : i32, i32
  }
}

</mosaic_0001>

<bundles_post_ra>
// kernel: mlp_pallas.1
= control target key start
LH: loop header
LB: loop body
LE: loop exit
PB: predicated region body
PF: predicated region fallthrough
CT: control target
= control target key end

     0   :  { %vm39_vm0 = vcmask 261120   ;;  %s436_s1 = inlined_call_operand.vmem [shape: f32[32,128], index: 1, kind: input, shape index: {}]   ;;  %s437_s0 = inlined_call_operand.vmem [shape: f32[16,32], index: 0, kind: input, shape index: {}]   ;;  %s438_s3 = inlined_call_operand.vmem [shape: f32[128,128], index: 3, kind: input, shape index: {}]   ;;  %s439_s2 = inlined_call_operand.vmem [shape: f32[1,128], index: 2, kind: input, shape index: {}]   ;;  %s440_s4 = inlined_call_operand.vmem [shape: f32[1,128], index: 4, kind: input, shape index: {}]   ;;  %s441_s5 = inlined_call_operand.vmem [shape: f32[16,128], index: 5, kind: output, shape index: {}]  }
   0x1   :  { %v31_v0 = vld [vmem:[%s436_s1 + $0x18] sm:$0xff]  ;;  %v30_v1 = vld [vmem:[%s436_s1 + $0x10] sm:$0xff]  ;;  %v26_v2 = vld [vmem:[%s437_s0] sm:$0xff] }
   0x2   :  { %276 = vmatprep.subr.mxu0 %v31_v0  ;;  %v29_v3 = vld [vmem:[%s436_s1 + $0x8] sm:$0xff]  ;;  %284 = vmatprep.mubr.msk.f32.mxu0 %vm39_vm0, %v26_v2  ;;  %v148_v4 = vld [vmem:[%s438_s3 + $0x78] sm:$0xff]  ;;  %v147_v5 = vld [vmem:[%s438_s3 + $0x70] sm:$0xff] }
   0x3   :  { %277 = vmatpush3.msra.mxu0 %v31_v0  ;;  %287 = vmatprep.subr.mxu1 %v148_v4  ;;  %v28_v6 = vld [vmem:[%s436_s1] sm:$0xff]  ;;  %v146_v7 = vld [vmem:[%s438_s3 + $0x68] sm:$0xff]  ;;  %v144_v10 = vld [vmem:[%s438_s3 + $0x58] sm:$0xff] }
   0x4   :  { %278 = vmatprep.subr.mxu0 %v30_v1  ;;  %288 = vmatpush3.msra.mxu1 %v148_v4  ;;  %v27_v8 = vld [vmem:[%s437_s0 + $0x8] sm:$0xff]  ;;  %v145_v9 = vld [vmem:[%s438_s3 + $0x60] sm:$0xff]  ;;  %v143_v11 = vld [vmem:[%s438_s3 + $0x50] sm:$0xff] }
   0x5   :  { %279 = vmatpush3.msra.mxu0 %v30_v1  ;;  %289 = vmatprep.subr.mxu1 %v147_v5  ;;  %v142_v12 = vld [vmem:[%s438_s3 + $0x48] sm:$0xff]  ;;  %v141_v13 = vld [vmem:[%s438_s3 + $0x40] sm:$0xff]  ;;  %v140_v14 = vld [vmem:[%s438_s3 + $0x38] sm:$0xff] }
   0x6   :  { %280 = vmatprep.subr.mxu0 %v29_v3  ;;  %290 = vmatpush3.msra.mxu1 %v147_v5  ;;  %v139_v15 = vld [vmem:[%s438_s3 + $0x30] sm:$0xff]  ;;  %v138_v16 = vld [vmem:[%s438_s3 + $0x28] sm:$0xff]  ;;  %v137_v17 = vld [vmem:[%s438_s3 + $0x20] sm:$0xff] }
   0x7   :  { %281 = vmatpush3.msra.mxu0 %v29_v3  ;;  %291 = vmatprep.subr.mxu1 %v146_v7  ;;  %v136_v18 = vld [vmem:[%s438_s3 + $0x18] sm:$0xff]  ;;  %v135_v19 = vld [vmem:[%s438_s3 + $0x10] sm:$0xff]  ;;  %v134_v20 = vld [vmem:[%s438_s3 + $0x8] sm:$0xff] }
   0x8   :  { %282 = vmatprep.subr.mxu0 %v28_v6  ;;  %292 = vmatpush3.msra.mxu1 %v146_v7  ;;  %v133_v21 = vld [vmem:[%s438_s3] sm:$0xff] }
   0x9   :  { %283 = vmatpush3.msra.mxu0 %v28_v6  ;;  %293 = vmatprep.subr.mxu1 %v145_v9  ;;  %v248_v22 = vld [vmem:[%s439_s2] ss:$0 sm:$0xff] }
   0xa   :  { %285 = vmatmul.mubr.msk.f32.vlgmr.msra.gmra.mxu0 %vm39_vm0, %v27_v8  ;;  %294 = vmatpush3.msra.mxu1 %v145_v9  ;;  %v251_v37 = vld [vmem:[%s440_s4] ss:$0 sm:$0xff] }
   0xb   :  { %295 = vmatprep.subr.mxu1 %v144_v10 }
   0xc   :  { %296 = vmatpush3.msra.mxu1 %v144_v10 }
   0xd   :  { %297 = vmatprep.subr.mxu1 %v143_v11 }
   0xe   :  { %298 = vmatpush3.msra.mxu1 %v143_v11 }
   0xf   :  { %299 = vmatprep.subr.mxu1 %v142_v12 }
  0x10   :  { %300 = vmatpush3.msra.mxu1 %v142_v12 }
  0x11   :  { %301 = vmatprep.subr.mxu1 %v141_v13 }
  0x12   :  { %302 = vmatpush3.msra.mxu1 %v141_v13 }
  0x13   :  { %303 = vmatprep.subr.mxu1 %v140_v14 }
  0x14   :  { %304 = vmatpush3.msra.mxu1 %v140_v14 }
  0x15   :  { %305 = vmatprep.subr.mxu1 %v139_v15 }
  0x16   :  { %306 = vmatpush3.msra.mxu1 %v139_v15 }
  0x17   :  { %307 = vmatprep.subr.mxu1 %v138_v16 }
  0x18   :  { %308 = vmatpush3.msra.mxu1 %v138_v16 }
  0x19   :  { %309 = vmatprep.subr.mxu1 %v137_v17 }
  0x1a   :  { %310 = vmatpush3.msra.mxu1 %v137_v17 }
  0x1b   :  { %311 = vmatprep.subr.mxu1 %v136_v18 }
  0x1c   :  { %312 = vmatpush3.msra.mxu1 %v136_v18 }
  0x1d   :  { %313 = vmatprep.subr.mxu1 %v135_v19 }
  0x1e   :  { %314 = vmatpush3.msra.mxu1 %v135_v19 }
  0x1f   :  { %315 = vmatprep.subr.mxu1 %v134_v20 }
  0x20   :  { %316 = vmatpush3.msra.mxu1 %v134_v20 }
  0x21   :  { %317 = vmatprep.subr.mxu1 %v133_v21 }
  0x22   :  { %318 = vmatpush3.msra.mxu1 %v133_v21 }
  0xca   :  { %v286_v23 = vpop.f32.mrf.mxu0 }
  0xcb   :  { %v118_v24 = vadd.f32 %v286_v23, %v248_v22 }
  0xcc   :  { %v112_v25 = vpop.f32.mrf.mxu0 }
  0xcd   :  { %v124_v26 = vmul.f32 0.70710677, %v118_v24  ;;  %v113_v27 = vadd.f32 %v248_v22, %v112_v25  ;;  %v122_v34 = vmul.f32 0.5, %v118_v24 }
  0xcf   :  { %322 = verf.f32 %v124_v26  ;;  %v123_v28 = vmul.f32 0.70710677, %v113_v27  ;;  %v121_v32 = vmul.f32 0.5, %v113_v27 }
  0xd1   :  { %324 = verf.f32 %v123_v28 }
  0xdc   :  { %v323_v29 = vpop.eup %322 }
  0xdd   :  { %v128_v31 = vadd.f32 1.0, %v323_v29 }
  0xde   :  { %v325_v30 = vpop.eup %324 }
  0xdf   :  { %v127_v33 = vadd.f32 1.0, %v325_v30  ;;  %v130_v36 = vmul.f32 %v128_v31, %v122_v34 }
  0xe1   :  { %v129_v35 = vmul.f32 %v127_v33, %v121_v32 }
  0xe3   :  { %319 = vmatprep.mubr.f32.mxu1 %v129_v35 }
  0xe4   :  { %320 = vmatmul.mubr.f32.vlgmr.msra.gmra.mxu1 %v130_v36 }
 0x1a4   :  { %v321_v38 = vpop.f32.mrf.mxu1 }
 0x1a5   :  { %v241_v39 = vadd.f32 %v321_v38, %v251_v37 }
 0x1a6   :  { %v215_v40 = vpop.f32.mrf.mxu1 }
 0x1a7   :  { %243 = vst [vmem:[%s441_s5 + $0x8] sm:$0xff] %v241_v39  ;;  %v240_v41 = vadd.f32 %v251_v37, %v215_v40 }
 0x1a9   :  { %242 = vst [vmem:[%s441_s5] sm:$0xff] %v240_v41 }

</bundles_post_ra>
